<compile_context>
chip_gen: v7x
topology: tpu7x:2x2x1
jax: 0.10.0
libtpu: 0.0.40
codegen_flags: <defaults>
</compile_context>

<pallas_src>
import math

import jax
import jax.numpy as jnp
from jax.experimental import pallas as pl
from jax.experimental.pallas import tpu as pltpu


def _pool_out_size(size, k, s):
    """PyTorch MaxPool2d output size with ceil_mode=True, no padding, dilation=1."""
    out = math.ceil((size - k) / s) + 1
    # PyTorch rule: the last pooling window must start strictly inside the input.
    if (out - 1) * s >= size:
        out -= 1
    return out


def _make_maxpool_kernel(H, W, K, S, H_out, W_out):
    """Kernel: max-pool an (H, W, TB) lane-dense block into (H_out, W_out, TB).

    ceil_mode=True semantics: edge windows may be partial; handled by statically
    clamping the window extents (works for any dtype, no -inf padding needed).
    All maxima are elementwise over the TB lane axis (pure VPU, no XLU).
    NOTE: the (H_out, W_out, window) loops are unrolled at trace time — fine for
    the module's 5x5 spatial size; large images would want a fori_loop over rows.
    """

    def kernel(x_ref, o_ref):
        for oh in range(H_out):
            rs = oh * S
            re = min(rs + K, H)       # ceil_mode partial-window clamp (rows)
            for ow in range(W_out):
                cs = ow * S
                ce = min(cs + K, W)   # ceil_mode partial-window clamp (cols)
                acc = x_ref[rs, cs:cs + 1, :]          # (1, TB), lane-dense
                for r in range(rs, re):
                    for c in range(cs, ce):
                        if r == rs and c == cs:
                            continue
                        acc = jnp.maximum(acc, x_ref[r, c:c + 1, :])
                o_ref[oh, ow:ow + 1, :] = acc          # lane-dense store

    return kernel


def _pick_lane_tile(H, W, H_out, W_out, itemsize, nc128):
    """Choose the lane-batch tile TB (multiple of 128)."""
    # Conservative VMEM budget: double-buffered in+out blocks must fit even
    # v5e's 16 MiB scoped default (and v7x's smaller 64 MiB physical VMEM).
    budget = 8 * 1024 * 1024
    per_lane = 2 * (H * W + H_out * W_out) * itemsize  # dbl-buffered bytes / lane
    tb = max(128, (budget // per_lane) // 128 * 128)
    tb = min(tb, 4096, nc128)
    # Prefer >=2 grid steps when there is enough work, so v7x's 2 TCs both run.
    if nc128 // tb < 2 and nc128 >= 256:
        tb = max(128, (nc128 // 2) // 128 * 128)
    return tb


def tudui_forward(x, kernel_size=3, stride=None):
    """MaxPool2d(kernel_size=3, ceil_mode=True) forward. x: (N, C, H, W)."""
    if stride is None:
        stride = kernel_size
    K, S = kernel_size, stride
    N, C, H, W = x.shape
    H_out = _pool_out_size(H, K, S)
    W_out = _pool_out_size(W, K, S)
    NC = N * C
    itemsize = jnp.dtype(x.dtype).itemsize

    # Layout plumbing (cheap XLA ops): NCHW -> (H, W, N*C), batch on lanes.
    xt = jnp.transpose(x.reshape(NC, H, W), (1, 2, 0))

    nc128 = ((NC + 127) // 128) * 128
    TB = _pick_lane_tile(H, W, H_out, W_out, itemsize, nc128)
    nc_pad = ((NC + TB - 1) // TB) * TB
    if nc_pad != NC:
        # Padded lanes are independent fake images; their outputs are sliced off.
        xt = jnp.pad(xt, ((0, 0), (0, 0), (0, nc_pad - NC)))

    grid = (nc_pad // TB,)
    kernel = _make_maxpool_kernel(H, W, K, S, H_out, W_out)

    # Explicit VMEM limit derived from the blocks (double-buffered) + headroom.
    block_bytes = (H * W + H_out * W_out) * TB * itemsize
    vmem_limit = int(min(max(4 * block_bytes + (1 << 20), 1 << 22), 96 << 20))

    out = pl.pallas_call(
        kernel,
        out_shape=jax.ShapeDtypeStruct((H_out, W_out, nc_pad), x.dtype),
        grid=grid,
        # Last dim (TB) is a multiple of 128; second-last equals the full array
        # dim, so the (8, 128) block constraint is satisfied and stores are
        # unmasked lane-dense vst.
        in_specs=[pl.BlockSpec((H, W, TB), lambda i: (0, 0, i))],
        out_specs=pl.BlockSpec((H_out, W_out, TB), lambda i: (0, 0, i)),
        compiler_params=pltpu.CompilerParams(
            dimension_semantics=("parallel",),
            vmem_limit_bytes=vmem_limit,
        ),
    )(xt)

    out = out[:, :, :NC]  # drop lane padding
    return jnp.transpose(out, (2, 0, 1)).reshape(N, C, H_out, W_out)


def _reference_maxpool_ceil(x, k=3, s=3):
    """Pure-JAX reference (k == s): pad with -inf to window multiple, block max."""
    if k != s:
        raise NotImplementedError("reference only covers kernel_size == stride")
    N, C, H, W = x.shape
    H_out = _pool_out_size(H, k, s)
    W_out = _pool_out_size(W, k, s)
    H_pad = (H_out - 1) * s + k
    W_pad = (W_out - 1) * s + k
    xp = jnp.pad(
        x,
        ((0, 0), (0, 0), (0, H_pad - H), (0, W_pad - W)),
        constant_values=-jnp.inf,
    )
    xp = xp.reshape(N, C, H_out, s, W_out, s)
    return xp.max(axis=(3, 5))


if __name__ == "__main__":
    key = jax.random.PRNGKey(0)

    # Primary case: the module reshapes its input to (-1, 1, 5, 5); batch=2.
    x = jax.random.normal(key, (2, 1, 5, 5), dtype=jnp.float32)
    y = jax.block_until_ready(tudui_forward(x))
    y_ref = _reference_maxpool_ceil(x, k=3, s=3)
    assert y.shape == (2, 1, 2, 2), y.shape
    assert jnp.allclose(y, y_ref), (y, y_ref)

    # Larger N*C case: exercises lane padding, lane-tile selection, multi-step grid.
    x2 = jax.random.normal(jax.random.PRNGKey(1), (25, 12, 5, 5), dtype=jnp.float32)
    y2 = jax.block_until_ready(tudui_forward(x2))
    y2_ref = _reference_maxpool_ceil(x2, k=3, s=3)
    assert y2.shape == (25, 12, 2, 2), y2.shape
    assert jnp.allclose(y2, y2_ref), "large-batch mismatch"

    print("KERNEL_OK")
</pallas_src>

<mosaic_0001>
module attributes {stable_mosaic.version = 11 : i64} {
  func.func @kernel(%arg0: i32, %arg1: memref<5x5x128xf32, #tpu.memory_space<vmem>>, %arg2: memref<2x2x128xf32, #tpu.memory_space<vmem>>) attributes {dimension_semantics = [#tpu.dimension_semantics<parallel>], iteration_bounds = array<i64: 1>, scalar_prefetch = 0 : i64, scratch_operands = 0 : i64, tpu.core_type = #tpu.core_type<tc>, window_params = [{transform_indices = @transform_0, window_bounds = array<i64: 5, 5, 128>}, {transform_indices = @transform_1, window_bounds = array<i64: 2, 2, 128>}]} {
    %c0 = arith.constant 0 : index
    %c0_0 = arith.constant 0 : index
    %c0_1 = arith.constant 0 : index
    %0 = vector.load %arg1[%c0, %c0_0, %c0_1] : memref<5x5x128xf32, #tpu.memory_space<vmem>>, vector<1x1x128xf32>
    %1 = vector.shape_cast %0 : vector<1x1x128xf32> to vector<1x128xf32>
    %c0_2 = arith.constant 0 : index
    %c1 = arith.constant 1 : index
    %c0_3 = arith.constant 0 : index
    %2 = vector.load %arg1[%c0_2, %c1, %c0_3] : memref<5x5x128xf32, #tpu.memory_space<vmem>>, vector<1x1x128xf32>
    %3 = vector.shape_cast %2 : vector<1x1x128xf32> to vector<1x128xf32>
    %4 = arith.maximumf %1, %3 : vector<1x128xf32>
    %c0_4 = arith.constant 0 : index
    %c2 = arith.constant 2 : index
    %c0_5 = arith.constant 0 : index
    %5 = vector.load %arg1[%c0_4, %c2, %c0_5] : memref<5x5x128xf32, #tpu.memory_space<vmem>>, vector<1x1x128xf32>
    %6 = vector.shape_cast %5 : vector<1x1x128xf32> to vector<1x128xf32>
    %7 = arith.maximumf %4, %6 : vector<1x128xf32>
    %c1_6 = arith.constant 1 : index
    %c0_7 = arith.constant 0 : index
    %c0_8 = arith.constant 0 : index
    %8 = vector.load %arg1[%c1_6, %c0_7, %c0_8] : memref<5x5x128xf32, #tpu.memory_space<vmem>>, vector<1x1x128xf32>
    %9 = vector.shape_cast %8 : vector<1x1x128xf32> to vector<1x128xf32>
    %10 = arith.maximumf %7, %9 : vector<1x128xf32>
    %c1_9 = arith.constant 1 : index
    %c1_10 = arith.constant 1 : index
    %c0_11 = arith.constant 0 : index
    %11 = vector.load %arg1[%c1_9, %c1_10, %c0_11] : memref<5x5x128xf32, #tpu.memory_space<vmem>>, vector<1x1x128xf32>
    %12 = vector.shape_cast %11 : vector<1x1x128xf32> to vector<1x128xf32>
    %13 = arith.maximumf %10, %12 : vector<1x128xf32>
    %c1_12 = arith.constant 1 : index
    %c2_13 = arith.constant 2 : index
    %c0_14 = arith.constant 0 : index
    %14 = vector.load %arg1[%c1_12, %c2_13, %c0_14] : memref<5x5x128xf32, #tpu.memory_space<vmem>>, vector<1x1x128xf32>
    %15 = vector.shape_cast %14 : vector<1x1x128xf32> to vector<1x128xf32>
    %16 = arith.maximumf %13, %15 : vector<1x128xf32>
    %c2_15 = arith.constant 2 : index
    %c0_16 = arith.constant 0 : index
    %c0_17 = arith.constant 0 : index
    %17 = vector.load %arg1[%c2_15, %c0_16, %c0_17] : memref<5x5x128xf32, #tpu.memory_space<vmem>>, vector<1x1x128xf32>
    %18 = vector.shape_cast %17 : vector<1x1x128xf32> to vector<1x128xf32>
    %19 = arith.maximumf %16, %18 : vector<1x128xf32>
    %c2_18 = arith.constant 2 : index
    %c1_19 = arith.constant 1 : index
    %c0_20 = arith.constant 0 : index
    %20 = vector.load %arg1[%c2_18, %c1_19, %c0_20] : memref<5x5x128xf32, #tpu.memory_space<vmem>>, vector<1x1x128xf32>
    %21 = vector.shape_cast %20 : vector<1x1x128xf32> to vector<1x128xf32>
    %22 = arith.maximumf %19, %21 : vector<1x128xf32>
    %c2_21 = arith.constant 2 : index
    %c2_22 = arith.constant 2 : index
    %c0_23 = arith.constant 0 : index
    %23 = vector.load %arg1[%c2_21, %c2_22, %c0_23] : memref<5x5x128xf32, #tpu.memory_space<vmem>>, vector<1x1x128xf32>
    %24 = vector.shape_cast %23 : vector<1x1x128xf32> to vector<1x128xf32>
    %25 = arith.maximumf %22, %24 : vector<1x128xf32>
    %c0_24 = arith.constant 0 : index
    %c0_25 = arith.constant 0 : index
    %c0_26 = arith.constant 0 : index
    %26 = vector.load %arg2[%c0_24, %c0_25, %c0_26] : memref<2x2x128xf32, #tpu.memory_space<vmem>>, vector<1x1x128xf32>
    %27 = vector.shape_cast %26 : vector<1x1x128xf32> to vector<1x128xf32>
    %28 = vector.shape_cast %25 : vector<1x128xf32> to vector<1x1x128xf32>
    tpu.vector_store %arg2[%c0_24, %c0_25, %c0_26], %28 {strides = array<i32>} : memref<2x2x128xf32, #tpu.memory_space<vmem>>, vector<1x1x128xf32>,
    %c0_27 = arith.constant 0 : index
    %c3 = arith.constant 3 : index
    %c0_28 = arith.constant 0 : index
    %29 = vector.load %arg1[%c0_27, %c3, %c0_28] : memref<5x5x128xf32, #tpu.memory_space<vmem>>, vector<1x1x128xf32>
    %30 = vector.shape_cast %29 : vector<1x1x128xf32> to vector<1x128xf32>
    %c0_29 = arith.constant 0 : index
    %c4 = arith.constant 4 : index
    %c0_30 = arith.constant 0 : index
    %31 = vector.load %arg1[%c0_29, %c4, %c0_30] : memref<5x5x128xf32, #tpu.memory_space<vmem>>, vector<1x1x128xf32>
    %32 = vector.shape_cast %31 : vector<1x1x128xf32> to vector<1x128xf32>
    %33 = arith.maximumf %30, %32 : vector<1x128xf32>
    %c1_31 = arith.constant 1 : index
    %c3_32 = arith.constant 3 : index
    %c0_33 = arith.constant 0 : index
    %34 = vector.load %arg1[%c1_31, %c3_32, %c0_33] : memref<5x5x128xf32, #tpu.memory_space<vmem>>, vector<1x1x128xf32>
    %35 = vector.shape_cast %34 : vector<1x1x128xf32> to vector<1x128xf32>
    %36 = arith.maximumf %33, %35 : vector<1x128xf32>
    %c1_34 = arith.constant 1 : index
    %c4_35 = arith.constant 4 : index
    %c0_36 = arith.constant 0 : index
    %37 = vector.load %arg1[%c1_34, %c4_35, %c0_36] : memref<5x5x128xf32, #tpu.memory_space<vmem>>, vector<1x1x128xf32>
    %38 = vector.shape_cast %37 : vector<1x1x128xf32> to vector<1x128xf32>
    %39 = arith.maximumf %36, %38 : vector<1x128xf32>
    %c2_37 = arith.constant 2 : index
    %c3_38 = arith.constant 3 : index
    %c0_39 = arith.constant 0 : index
    %40 = vector.load %arg1[%c2_37, %c3_38, %c0_39] : memref<5x5x128xf32, #tpu.memory_space<vmem>>, vector<1x1x128xf32>
    %41 = vector.shape_cast %40 : vector<1x1x128xf32> to vector<1x128xf32>
    %42 = arith.maximumf %39, %41 : vector<1x128xf32>
    %c2_40 = arith.constant 2 : index
    %c4_41 = arith.constant 4 : index
    %c0_42 = arith.constant 0 : index
    %43 = vector.load %arg1[%c2_40, %c4_41, %c0_42] : memref<5x5x128xf32, #tpu.memory_space<vmem>>, vector<1x1x128xf32>
    %44 = vector.shape_cast %43 : vector<1x1x128xf32> to vector<1x128xf32>
    %45 = arith.maximumf %42, %44 : vector<1x128xf32>
    %c0_43 = arith.constant 0 : index
    %c1_44 = arith.constant 1 : index
    %c0_45 = arith.constant 0 : index
    %46 = vector.load %arg2[%c0_43, %c1_44, %c0_45] : memref<2x2x128xf32, #tpu.memory_space<vmem>>, vector<1x1x128xf32>
    %47 = vector.shape_cast %46 : vector<1x1x128xf32> to vector<1x128xf32>
    %48 = vector.shape_cast %45 : vector<1x128xf32> to vector<1x1x128xf32>
    tpu.vector_store %arg2[%c0_43, %c1_44, %c0_45], %48 {strides = array<i32>} : memref<2x2x128xf32, #tpu.memory_space<vmem>>, vector<1x1x128xf32>,
    %c3_46 = arith.constant 3 : index
    %c0_47 = arith.constant 0 : index
    %c0_48 = arith.constant 0 : index
    %49 = vector.load %arg1[%c3_46, %c0_47, %c0_48] : memref<5x5x128xf32, #tpu.memory_space<vmem>>, vector<1x1x128xf32>
    %50 = vector.shape_cast %49 : vector<1x1x128xf32> to vector<1x128xf32>
    %c3_49 = arith.constant 3 : index
    %c1_50 = arith.constant 1 : index
    %c0_51 = arith.constant 0 : index
    %51 = vector.load %arg1[%c3_49, %c1_50, %c0_51] : memref<5x5x128xf32, #tpu.memory_space<vmem>>, vector<1x1x128xf32>
    %52 = vector.shape_cast %51 : vector<1x1x128xf32> to vector<1x128xf32>
    %53 = arith.maximumf %50, %52 : vector<1x128xf32>
    %c3_52 = arith.constant 3 : index
    %c2_53 = arith.constant 2 : index
    %c0_54 = arith.constant 0 : index
    %54 = vector.load %arg1[%c3_52, %c2_53, %c0_54] : memref<5x5x128xf32, #tpu.memory_space<vmem>>, vector<1x1x128xf32>
    %55 = vector.shape_cast %54 : vector<1x1x128xf32> to vector<1x128xf32>
    %56 = arith.maximumf %53, %55 : vector<1x128xf32>
    %c4_55 = arith.constant 4 : index
    %c0_56 = arith.constant 0 : index
    %c0_57 = arith.constant 0 : index
    %57 = vector.load %arg1[%c4_55, %c0_56, %c0_57] : memref<5x5x128xf32, #tpu.memory_space<vmem>>, vector<1x1x128xf32>
    %58 = vector.shape_cast %57 : vector<1x1x128xf32> to vector<1x128xf32>
    %59 = arith.maximumf %56, %58 : vector<1x128xf32>
    %c4_58 = arith.constant 4 : index
    %c1_59 = arith.constant 1 : index
    %c0_60 = arith.constant 0 : index
    %60 = vector.load %arg1[%c4_58, %c1_59, %c0_60] : memref<5x5x128xf32, #tpu.memory_space<vmem>>, vector<1x1x128xf32>
    %61 = vector.shape_cast %60 : vector<1x1x128xf32> to vector<1x128xf32>
    %62 = arith.maximumf %59, %61 : vector<1x128xf32>
    %c4_61 = arith.constant 4 : index
    %c2_62 = arith.constant 2 : index
    %c0_63 = arith.constant 0 : index
    %63 = vector.load %arg1[%c4_61, %c2_62, %c0_63] : memref<5x5x128xf32, #tpu.memory_space<vmem>>, vector<1x1x128xf32>
    %64 = vector.shape_cast %63 : vector<1x1x128xf32> to vector<1x128xf32>
    %65 = arith.maximumf %62, %64 : vector<1x128xf32>
    %c1_64 = arith.constant 1 : index
    %c0_65 = arith.constant 0 : index
    %c0_66 = arith.constant 0 : index
    %66 = vector.load %arg2[%c1_64, %c0_65, %c0_66] : memref<2x2x128xf32, #tpu.memory_space<vmem>>, vector<1x1x128xf32>
    %67 = vector.shape_cast %66 : vector<1x1x128xf32> to vector<1x128xf32>
    %68 = vector.shape_cast %65 : vector<1x128xf32> to vector<1x1x128xf32>
    tpu.vector_store %arg2[%c1_64, %c0_65, %c0_66], %68 {strides = array<i32>} : memref<2x2x128xf32, #tpu.memory_space<vmem>>, vector<1x1x128xf32>,
    %c3_67 = arith.constant 3 : index
    %c3_68 = arith.constant 3 : index
    %c0_69 = arith.constant 0 : index
    %69 = vector.load %arg1[%c3_67, %c3_68, %c0_69] : memref<5x5x128xf32, #tpu.memory_space<vmem>>, vector<1x1x128xf32>
    %70 = vector.shape_cast %69 : vector<1x1x128xf32> to vector<1x128xf32>
    %c3_70 = arith.constant 3 : index
    %c4_71 = arith.constant 4 : index
    %c0_72 = arith.constant 0 : index
    %71 = vector.load %arg1[%c3_70, %c4_71, %c0_72] : memref<5x5x128xf32, #tpu.memory_space<vmem>>, vector<1x1x128xf32>
    %72 = vector.shape_cast %71 : vector<1x1x128xf32> to vector<1x128xf32>
    %73 = arith.maximumf %70, %72 : vector<1x128xf32>
    %c4_73 = arith.constant 4 : index
    %c3_74 = arith.constant 3 : index
    %c0_75 = arith.constant 0 : index
    %74 = vector.load %arg1[%c4_73, %c3_74, %c0_75] : memref<5x5x128xf32, #tpu.memory_space<vmem>>, vector<1x1x128xf32>
    %75 = vector.shape_cast %74 : vector<1x1x128xf32> to vector<1x128xf32>
    %76 = arith.maximumf %73, %75 : vector<1x128xf32>
    %c4_76 = arith.constant 4 : index
    %c4_77 = arith.constant 4 : index
    %c0_78 = arith.constant 0 : index
    %77 = vector.load %arg1[%c4_76, %c4_77, %c0_78] : memref<5x5x128xf32, #tpu.memory_space<vmem>>, vector<1x1x128xf32>
    %78 = vector.shape_cast %77 : vector<1x1x128xf32> to vector<1x128xf32>
    %79 = arith.maximumf %76, %78 : vector<1x128xf32>
    %c1_79 = arith.constant 1 : index
    %c1_80 = arith.constant 1 : index
    %c0_81 = arith.constant 0 : index
    %80 = vector.load %arg2[%c1_79, %c1_80, %c0_81] : memref<2x2x128xf32, #tpu.memory_space<vmem>>, vector<1x1x128xf32>
    %81 = vector.shape_cast %80 : vector<1x1x128xf32> to vector<1x128xf32>
    %82 = vector.shape_cast %79 : vector<1x128xf32> to vector<1x1x128xf32>
    tpu.vector_store %arg2[%c1_79, %c1_80, %c0_81], %82 {strides = array<i32>} : memref<2x2x128xf32, #tpu.memory_space<vmem>>, vector<1x1x128xf32>,
    return
  }
  func.func @transform_0(%arg0: i32) -> (i32, i32, i32) {
    %c0_i32 = arith.constant 0 : i32
    %c0_i32_0 = arith.constant 0 : i32
    %c0_i32_1 = arith.constant 0 : i32
    return %c0_i32, %c0_i32_0, %arg0 : i32, i32, i32
  }
  func.func @transform_1(%arg0: i32) -> (i32, i32, i32) {
    %c0_i32 = arith.constant 0 : i32
    %c0_i32_0 = arith.constant 0 : i32
    %c0_i32_1 = arith.constant 0 : i32
    return %c0_i32, %c0_i32_0, %arg0 : i32, i32, i32
  }
}

</mosaic_0001>

<bundles_post_ra>
// kernel: tpu_custom_call.1
= control target key start
LH: loop header
LB: loop body
LE: loop exit
PB: predicated region body
PF: predicated region fallthrough
CT: control target
= control target key end

     0   :  { %6 = vsyncpa [#allocation3], 0  ;;  %s189_s0 = inlined_call_operand.hbm [shape: f32[5,5,128], index: 0, kind: input, shape index: {}]   ;;  %s190_s1 = inlined_call_operand.hbm [shape: f32[2,2,128], index: 1, kind: output, shape index: {}]  }
   0x1   :  { %7 = vsyncpa [#allocation4], 0  ;;  %s149_s6 = smov [#allocation2]   ;;  %s101_s10 = scalar_lea.hbm %s189_s0, 640 }
   0x2   :  { %s13_s7 = sshll.u32 %s149_s6, 4  ;;  %p102_p0 = scmp.ne.s32.totalorder %s189_s0, %s101_s10  ;;  %s14_s7 = int_to_ptr.vmem [resolvable:$true] %s13_s7 }
   0x3   :  { %p105_p1 = scmp.lt.u32.totalorder %s101_s10, %s189_s0 }
   0x5   :  { %p107_p2 = pnand %p105_p1, %p102_p0 }
   0x7   :  { %110 = shalt.err (!%p107_p2)
}
   0x8   :  { %s111_s15 = scalar_lea.vmem %s14_s7, 640  ;;  %p116_p4 = scmp.lt.s32.totalorder %s14_s7, %s14_s7 }
   0x9   :  { %p112_p3 = scmp.ne.s32.totalorder %s14_s7, %s111_s15  ;;  %p117_p5 = scmp.lt.s32.totalorder %s111_s15, %s111_s15 }
   0xb   :  { %p118_p6 = por %p117_p5, %p116_p4 }
   0xd   :  { %p119_p7 = pnand %p118_p6, %p112_p3 }
   0xf   :  { %122 = shalt.err (!%p119_p7)
}
  0x10   :  { %s150_s16 = smov 128   ;;  %s151_s17 = smov 8  }
  0x11   :  { %19 = dma.hbm_to_vmem [thread:$0]  %s189_s0, 640, %s14_s7, [#allocation3], %s150_s16, %s150_s16, %s151_s17  }
  0x12   :  { %145 = dma.done.wait [#allocation3], 640  }
  0x13   :  { %146 = vsyncadd [#allocation3], 4294966656  ;;  %v23_v0 = vld [vmem:[#allocation2] sm:$0x1]  ;;  %v24_v1 = vld [vmem:[#allocation2 + $0x1] sm:$0x1] }
  0x14   :  { %v26_v2 = vld [vmem:[#allocation2 + $0x2] sm:$0x1]  ;;  %v25_v3 = vmax.f32 %v23_v0, %v24_v1  ;;  %v29_v4 = vld [vmem:[#allocation2 + $0x8] sm:$0x1]  ;;  %v43_v6 = vld [vmem:[#allocation2 + $0x3] sm:$0x1] }
  0x15   :  { %v44_v7 = vld [vmem:[#allocation2 + $0x4] sm:$0x1]  ;;  %v46_v8 = vld [vmem:[#allocation2 + $0xb] sm:$0x1]  ;;  %v31_v9 = vld [vmem:[#allocation2 + $0x9] sm:$0x1] }
  0x16   :  { %v27_v5 = vmax.f32 %v25_v3, %v26_v2  ;;  %v45_v10 = vmax.f32 %v43_v6, %v44_v7  ;;  %v48_v11 = vld [vmem:[#allocation2 + $0xc] sm:$0x1]  ;;  %v56_v13 = vld [vmem:[#allocation2 + $0x18] sm:$0x1]  ;;  %v57_v14 = vld [vmem:[#allocation2 + $0x19] sm:$0x1] }
  0x17   :  { %v59_v15 = vld [vmem:[#allocation2 + $0x1a] sm:$0x1]  ;;  %v33_v16 = vld [vmem:[#allocation2 + $0xa] sm:$0x1]  ;;  %v50_v18 = vld [vmem:[#allocation2 + $0x13] sm:$0x1]  ;;  %v58_v19 = vmax.f32 %v56_v13, %v57_v14 }
  0x18   :  { %v30_v12 = vmax.f32 %v27_v5, %v29_v4  ;;  %v47_v17 = vmax.f32 %v45_v10, %v46_v8  ;;  %v62_v20 = vld [vmem:[#allocation2 + $0x20] sm:$0x1]  ;;  %v70_v22 = vld [vmem:[#allocation2 + $0x1b] sm:$0x1]  ;;  %v71_v23 = vld [vmem:[#allocation2 + $0x1c] sm:$0x1] }
  0x19   :  { %v73_v24 = vld [vmem:[#allocation2 + $0x23] sm:$0x1]  ;;  %v36_v25 = vld [vmem:[#allocation2 + $0x10] sm:$0x1]  ;;  %v60_v27 = vmax.f32 %v58_v19, %v59_v15  ;;  %v72_v28 = vmax.f32 %v70_v22, %v71_v23  ;;  %v52_v30 = vld [vmem:[#allocation2 + $0x14] sm:$0x1] }
  0x1a   :  { %v32_v21 = vmax.f32 %v30_v12, %v31_v9  ;;  %v49_v26 = vmax.f32 %v47_v17, %v48_v11  ;;  %v64_v31 = vld [vmem:[#allocation2 + $0x21] sm:$0x1]  ;;  %v75_v32 = vld [vmem:[#allocation2 + $0x24] sm:$0x1]  ;;  %v38_v33 = vld [vmem:[#allocation2 + $0x11] sm:$0x1] }
  0x1b   :  { %v63_v35 = vmax.f32 %v60_v27, %v62_v20  ;;  %v74_v36 = vmax.f32 %v72_v28, %v73_v24  ;;  %v66_v38 = vld [vmem:[#allocation2 + $0x22] sm:$0x1]  ;;  %v40_v39 = vld [vmem:[#allocation2 + $0x12] sm:$0x1]  ;;  %s152_s0 = smov [#allocation5]  }
  0x1c   :  { %v34_v29 = vmax.f32 %v32_v21, %v33_v16  ;;  %v51_v34 = vmax.f32 %v49_v26, %v50_v18  ;;  %s83_s20 = sshll.u32 %s152_s0, 4  ;;  %s84_s20 = int_to_ptr.vmem [resolvable:$true] %s83_s20 }
  0x1d   :  { %v65_v41 = vmax.f32 %v63_v35, %v64_v31  ;;  %v76_v42 = vmax.f32 %v74_v36, %v75_v32  ;;  %s123_s21 = scalar_lea.vmem %s84_s20, 64  ;;  %p128_p9 = scmp.lt.s32.totalorder %s84_s20, %s84_s20 }
  0x1e   :  { %v37_v37 = vmax.f32 %v34_v29, %v36_v25  ;;  %v53_v40 = vmax.f32 %v51_v34, %v52_v30  ;;  %p124_p8 = scmp.ne.s32.totalorder %s84_s20, %s123_s21  ;;  %p129_p10 = scmp.lt.s32.totalorder %s123_s21, %s123_s21 }
  0x1f   :  { %v67_v44 = vmax.f32 %v65_v41, %v66_v38  ;;  %77 = vst [vmem:[#allocation5 + $0x3] sm:$0x1] %v76_v42 }
  0x20   :  { %v39_v43 = vmax.f32 %v37_v37, %v38_v33  ;;  %54 = vst [vmem:[#allocation5 + $0x1] sm:$0x1] %v53_v40  ;;  %p130_p11 = por %p129_p10, %p128_p9 }
  0x21   :  { %69 = vst [vmem:[#allocation5 + $0x2] sm:$0x1] %v67_v44 }
  0x22   :  { %v41_v45 = vmax.f32 %v39_v43, %v40_v39  ;;  %p131_p12 = pnand %p130_p11, %p124_p8 }
  0x24   :  { %42 = vst [vmem:[#allocation5] sm:$0x1] %v41_v45 }
  0x25   :  { %134 = shalt.err (!%p131_p12)
}
  0x26   :  { %s135_s24 = scalar_lea.hbm %s190_s1, 64 }
  0x27   :  { %p136_p13 = scmp.ne.s32.totalorder %s190_s1, %s135_s24  ;;  %p139_p0 = scmp.lt.u32.totalorder %s135_s24, %s190_s1 }
  0x29   :  { %p141_p1 = pnand %p139_p0, %p136_p13 }
  0x2b   :  { %144 = shalt.err (!%p141_p1)
}
  0x2c   :  { %s153_s29 = smov 32   ;;  %s154_s30 = smov 2  }
  0x2d   :  { %89 = dma.vmem_to_hbm [thread:$0]  %s84_s20, 64, %s190_s1, [#allocation4], %s153_s29, %s153_s29, %s154_s30  }
  0x2e   :  { %147 = dma.done.wait [#allocation4], 64  }
  0x2f   :  { %148 = vsyncadd [#allocation4], 4294967232 }
  0x30   :  { %93 = vsyncpa [#allocation3], 1 }
  0x31   :  { %94 = vsyncpa [#allocation4], 1 }

</bundles_post_ra>
